<compile_context>
chip_gen: v6e
topology: v6e:2x2x1
jax: 0.10.0
libtpu: 0.0.40
codegen_flags: <defaults>
</compile_context>

<pallas_src>
import math
import functools

import jax
import jax.numpy as jnp
from jax import lax
from jax.experimental import pallas as pl
from jax.experimental.pallas import tpu as pltpu


def _round_up(x, m):
    return ((x + m - 1) // m) * m


def _sublane(dtype):
    # rows per vreg: 8 for 4-byte, 16 for 2-byte, 32 for 1-byte dtypes.
    return max(8, 32 // jnp.dtype(dtype).itemsize)


def _row_sums_kernel(x_ref, s1_ref, s2_ref, acc1, acc2, *,
                     block_cols, chunk, tail_cols):
    # x_ref      : (tm, block_cols) input tile (VMEM)
    # s1/s2_ref  : (tm, 1) f32 outputs, resident across the reduction axis
    # acc1/acc2  : (tm, chunk) f32 lane-parallel accumulators (VMEM scratch)
    k = pl.program_id(1)
    nk = pl.num_programs(1)

    @pl.when(k == 0)
    def _():
        acc1[...] = jnp.zeros_like(acc1)
        acc2[...] = jnp.zeros_like(acc2)

    def accumulate(valid_cols):
        # valid_cols is a static Python int (<= block_cols).  Pure VALU work:
        # lane-parallel adds/multiplies on static, lane-aligned 128-wide slices.
        for j in range(block_cols // chunk):
            lo = j * chunk
            if lo >= valid_cols:
                break  # chunk entirely past the valid tail: skip it
            x = x_ref[:, lo:lo + chunk].astype(jnp.float32)
            if lo + chunk > valid_cols:
                # only the single straddling chunk of the last block is masked
                lane = lax.broadcasted_iota(jnp.int32, x.shape, 1)
                x = jnp.where(lane < (valid_cols - lo), x, 0.0)
            acc1[...] += x
            acc2[...] += x * x

    if tail_cols == block_cols:
        accumulate(block_cols)
    else:
        @pl.when(k < nk - 1)
        def _():
            accumulate(block_cols)

        @pl.when(k == nk - 1)
        def _():
            accumulate(tail_cols)

    @pl.when(k == nk - 1)
    def _():
        # single cross-lane (XLU) reduction per row block, out of the hot loop
        s1_ref[...] = jnp.sum(acc1[...], axis=1, keepdims=True)
        s2_ref[...] = jnp.sum(acc2[...], axis=1, keepdims=True)


def _row_sums(x2):
    """Per-row (sum, sum of squares) in f32 over the last axis of a 2-D array."""
    M, N = x2.shape
    itemsize = jnp.dtype(x2.dtype).itemsize
    sub = _sublane(x2.dtype)

    # Row tile: dtype-aware sublane multiple; aim for >= 2 row blocks (v7x megacore).
    if M <= sub:
        tm = M  # full dim — always a legal block shape
    else:
        tm = min(256, _round_up(-(-M // 2), sub))

    # Reduction tile: lane-dense, ~4 MiB per DMA, independent of N divisibility.
    if N < 128:
        tn = N  # full dim — single block, no masking
    else:
        tn_cap = max(128, min(8192, (4 * 1024 * 1024 // (tm * itemsize)) // 128 * 128))
        tn = min(tn_cap, _round_up(N, 128))

    grid_m = -(-M // tm)
    grid_k = -(-N // tn)
    tail = N - (grid_k - 1) * tn          # valid columns in the last reduction block
    chunk = min(tn, 128)

    kernel = functools.partial(_row_sums_kernel, block_cols=tn, chunk=chunk,
                               tail_cols=tail)

    tile_bytes = tm * tn * itemsize
    vmem_limit = int(min(64 * 1024 * 1024,
                         max(16 * 1024 * 1024, 3 * tile_bytes + 2 * 1024 * 1024)))

    s1, s2 = pl.pallas_call(
        kernel,
        out_shape=(
            jax.ShapeDtypeStruct((M, 1), jnp.float32),
            jax.ShapeDtypeStruct((M, 1), jnp.float32),
        ),
        grid_spec=pltpu.PrefetchScalarGridSpec(
            num_scalar_prefetch=0,
            grid=(grid_m, grid_k),
            in_specs=[pl.BlockSpec((tm, tn), lambda i, k: (i, k))],
            out_specs=(
                pl.BlockSpec((tm, 1), lambda i, k: (i, 0)),
                pl.BlockSpec((tm, 1), lambda i, k: (i, 0)),
            ),
            scratch_shapes=[
                pltpu.VMEM((tm, chunk), jnp.float32),
                pltpu.VMEM((tm, chunk), jnp.float32),
            ],
        ),
        compiler_params=pltpu.CompilerParams(
            dimension_semantics=("parallel", "arbitrary"),
            vmem_limit_bytes=vmem_limit,
        ),
    )(x2)
    return s1[:, 0], s2[:, 0]


def _choose_split(n):
    """Pick a row count R (multiple of 8) to reshape a flat length-n reduction."""
    for r in (256, 128, 64, 32, 16, 8):
        if n % r == 0 and n // r >= r:
            return r
    return None


def var_mean(x, dim=None, correction=1):
    """JAX/Pallas equivalent of torch.var_mean(input, dim, correction), keepdim=False."""
    ndim = x.ndim
    if dim is None:
        red = tuple(range(ndim))
    elif isinstance(dim, (tuple, list)):
        red = tuple(sorted(d % ndim for d in dim))
    else:
        red = (dim % ndim,)
    keep = tuple(d for d in range(ndim) if d not in red)
    lead_shape = tuple(x.shape[d] for d in keep)
    out_dtype = x.dtype
    M = math.prod(lead_shape) if lead_shape else 1
    N = math.prod(x.shape[d] for d in red) if red else 1

    if N == 0 or M == 0:
        nan = jnp.full(lead_shape, jnp.nan, out_dtype)
        return nan, nan

    # Layout glue: kept dims first, reduced dims last, flatten to (M, N).
    # (No-op copy when the reduced dims are already trailing.)
    x2 = jnp.transpose(x, keep + red).reshape(M, N)

    if M == 1:
        # dim=None / full reduction: reshape the flat reduction into rows so the
        # kernel reads every element once with full sublane utilisation (instead
        # of padding a single row up to 8 and reading 8x the data).
        r = _choose_split(N)
        if r is not None:
            s1r, s2r = _row_sums(x2.reshape(r, N // r))
            s1 = jnp.sum(s1r)
            s2 = jnp.sum(s2r)
        else:
            s1v, s2v = _row_sums(x2)
            s1, s2 = s1v[0], s2v[0]
    else:
        s1, s2 = _row_sums(x2)

    # Tiny elementwise epilogue in f32 over M values.
    # TODO(synk): single-pass sum/sumsq can lose precision when |mean| >> std;
    # a Welford / block-combine accumulator would match torch more closely there.
    mean = s1 / N
    ssd = jnp.maximum(s2 - s1 * mean, 0.0)
    denom = N - correction
    if denom > 0:
        var = ssd / denom
    else:
        var = jnp.full_like(ssd, jnp.nan)  # torch: dof <= 0 -> nan (with a warning)

    var = var.reshape(lead_shape).astype(out_dtype)
    mean = mean.reshape(lead_shape).astype(out_dtype)
    return var, mean


if __name__ == "__main__":
    key = jax.random.PRNGKey(0)
    batch, seq, hidden = 2, 8, 32
    x = jax.random.normal(key, (batch, seq, hidden), dtype=jnp.float32)

    # Reduce along the last dim (common trident VarMean usage), correction=1.
    var, mean = var_mean(x, dim=-1, correction=1)
    (var, mean) = jax.block_until_ready((var, mean))

    mean_ref = jnp.mean(x, axis=-1)
    var_ref = jnp.var(x, axis=-1, ddof=1)
    assert var.shape == (batch, seq) and mean.shape == (batch, seq)
    assert jnp.allclose(mean, mean_ref, atol=1e-5, rtol=1e-5)
    assert jnp.allclose(var, var_ref, atol=1e-4, rtol=1e-4)

    # Module default: dim=None -> reduce over all elements.
    var_all, mean_all = var_mean(x, dim=None, correction=1)
    (var_all, mean_all) = jax.block_until_ready((var_all, mean_all))
    assert jnp.allclose(mean_all, jnp.mean(x), atol=1e-5, rtol=1e-5)
    assert jnp.allclose(var_all, jnp.var(x, ddof=1), atol=1e-4, rtol=1e-4)

    print("KERNEL_OK")
</pallas_src>

<mosaic_0001>
module attributes {stable_mosaic.version = 11 : i64} {
  func.func @_row_sums_kernel(%arg0: i32, %arg1: i32, %arg2: memref<8x32xf32, #tpu.memory_space<vmem>>, %arg3: memref<8x1xf32, #tpu.memory_space<vmem>>, %arg4: memref<8x1xf32, #tpu.memory_space<vmem>>, %arg5: memref<8x32xf32, #tpu.memory_space<vmem>>, %arg6: memref<8x32xf32, #tpu.memory_space<vmem>>) attributes {dimension_semantics = [#tpu.dimension_semantics<parallel>, #tpu.dimension_semantics<arbitrary>], iteration_bounds = array<i64: 2, 1>, scalar_prefetch = 0 : i64, scratch_operands = 2 : i64, tpu.core_type = #tpu.core_type<tc>, window_params = [{transform_indices = @transform_0, window_bounds = array<i64: 8, 32>}, {transform_indices = @transform_1, window_bounds = array<i64: 8, 1>}, {transform_indices = @transform_2, window_bounds = array<i64: 8, 1>}]} {
    %c0_i32 = arith.constant 0 : i32
    %0 = arith.cmpi eq, %arg1, %c0_i32 : i32
    %1 = arith.extui %0 : i1 to i32
    %c0_i32_0 = arith.constant 0 : i32
    %2 = arith.cmpi ne, %1, %c0_i32_0 : i32
    scf.if %2 {
      %cst = arith.constant 0.000000e+00 : f32
      %14 = vector.broadcast %cst : f32 to vector<8x32xf32>
      %c0_12 = arith.constant 0 : index
      %c0_13 = arith.constant 0 : index
      %15 = vector.load %arg5[%c0_12, %c0_13] : memref<8x32xf32, #tpu.memory_space<vmem>>, vector<8x32xf32>
      tpu.vector_store %arg5[%c0_12, %c0_13], %14 {strides = array<i32>} : memref<8x32xf32, #tpu.memory_space<vmem>>, vector<8x32xf32>,
      %cst_14 = arith.constant 0.000000e+00 : f32
      %16 = vector.broadcast %cst_14 : f32 to vector<8x32xf32>
      %c0_15 = arith.constant 0 : index
      %c0_16 = arith.constant 0 : index
      %17 = vector.load %arg6[%c0_15, %c0_16] : memref<8x32xf32, #tpu.memory_space<vmem>>, vector<8x32xf32>
      tpu.vector_store %arg6[%c0_15, %c0_16], %16 {strides = array<i32>} : memref<8x32xf32, #tpu.memory_space<vmem>>, vector<8x32xf32>,
    } else {
    }
    %c0 = arith.constant 0 : index
    %c0_1 = arith.constant 0 : index
    %3 = vector.load %arg2[%c0, %c0_1] : memref<8x32xf32, #tpu.memory_space<vmem>>, vector<8x32xf32>
    %c0_2 = arith.constant 0 : index
    %c0_3 = arith.constant 0 : index
    %4 = vector.load %arg5[%c0_2, %c0_3] : memref<8x32xf32, #tpu.memory_space<vmem>>, vector<8x32xf32>
    %5 = arith.addf %4, %3 : vector<8x32xf32>
    %c0_4 = arith.constant 0 : index
    %c0_5 = arith.constant 0 : index
    %6 = vector.load %arg5[%c0_4, %c0_5] : memref<8x32xf32, #tpu.memory_space<vmem>>, vector<8x32xf32>
    tpu.vector_store %arg5[%c0_4, %c0_5], %5 {strides = array<i32>} : memref<8x32xf32, #tpu.memory_space<vmem>>, vector<8x32xf32>,
    %c0_6 = arith.constant 0 : index
    %c0_7 = arith.constant 0 : index
    %7 = vector.load %arg6[%c0_6, %c0_7] : memref<8x32xf32, #tpu.memory_space<vmem>>, vector<8x32xf32>
    %8 = arith.mulf %3, %3 : vector<8x32xf32>
    %9 = arith.addf %7, %8 : vector<8x32xf32>
    %c0_8 = arith.constant 0 : index
    %c0_9 = arith.constant 0 : index
    %10 = vector.load %arg6[%c0_8, %c0_9] : memref<8x32xf32, #tpu.memory_space<vmem>>, vector<8x32xf32>
    tpu.vector_store %arg6[%c0_8, %c0_9], %9 {strides = array<i32>} : memref<8x32xf32, #tpu.memory_space<vmem>>, vector<8x32xf32>,
    %c0_i32_10 = arith.constant 0 : i32
    %11 = arith.cmpi eq, %arg1, %c0_i32_10 : i32
    %12 = arith.extui %11 : i1 to i32
    %c0_i32_11 = arith.constant 0 : i32
    %13 = arith.cmpi ne, %12, %c0_i32_11 : i32
    scf.if %13 {
      %c0_12 = arith.constant 0 : index
      %c0_13 = arith.constant 0 : index
      %14 = vector.load %arg5[%c0_12, %c0_13] : memref<8x32xf32, #tpu.memory_space<vmem>>, vector<8x32xf32>
      %cst = arith.constant dense<0.000000e+00> : vector<8xf32>
      %15 = vector.multi_reduction <add>, %14, %cst [1] : vector<8x32xf32> to vector<8xf32>
      %16 = vector.shape_cast %15 : vector<8xf32> to vector<8x1xf32>
      %c0_14 = arith.constant 0 : index
      %c0_15 = arith.constant 0 : index
      %17 = vector.load %arg3[%c0_14, %c0_15] : memref<8x1xf32, #tpu.memory_space<vmem>>, vector<8x1xf32>
      tpu.vector_store %arg3[%c0_14, %c0_15], %16 {strides = array<i32>} : memref<8x1xf32, #tpu.memory_space<vmem>>, vector<8x1xf32>,
      %c0_16 = arith.constant 0 : index
      %c0_17 = arith.constant 0 : index
      %18 = vector.load %arg6[%c0_16, %c0_17] : memref<8x32xf32, #tpu.memory_space<vmem>>, vector<8x32xf32>
      %cst_18 = arith.constant dense<0.000000e+00> : vector<8xf32>
      %19 = vector.multi_reduction <add>, %18, %cst_18 [1] : vector<8x32xf32> to vector<8xf32>
      %20 = vector.shape_cast %19 : vector<8xf32> to vector<8x1xf32>
      %c0_19 = arith.constant 0 : index
      %c0_20 = arith.constant 0 : index
      %21 = vector.load %arg4[%c0_19, %c0_20] : memref<8x1xf32, #tpu.memory_space<vmem>>, vector<8x1xf32>
      tpu.vector_store %arg4[%c0_19, %c0_20], %20 {strides = array<i32>} : memref<8x1xf32, #tpu.memory_space<vmem>>, vector<8x1xf32>,
    } else {
    }
    return
  }
  func.func @transform_0(%arg0: i32, %arg1: i32) -> (i32, i32) {
    %c0_i32 = arith.constant 0 : i32
    return %arg0, %arg1 : i32, i32
  }
  func.func @transform_1(%arg0: i32, %arg1: i32) -> (i32, i32) {
    %c0_i32 = arith.constant 0 : i32
    %c0_i32_0 = arith.constant 0 : i32
    return %arg0, %c0_i32 : i32, i32
  }
  func.func @transform_2(%arg0: i32, %arg1: i32) -> (i32, i32) {
    %c0_i32 = arith.constant 0 : i32
    %c0_i32_0 = arith.constant 0 : i32
    return %arg0, %c0_i32 : i32, i32
  }
}

</mosaic_0001>

<bundles_post_ra>
// kernel: tpu_custom_call.1
= control target key start
LH: loop header
LB: loop body
LE: loop exit
PB: predicated region body
PF: predicated region fallthrough
CT: control target
= control target key end

     0   :  { %8 = vsyncpa [#allocation5], 0  ;;  %s594_s0 = inlined_call_operand.hbm [shape: f32[16,32], index: 0, kind: input, shape index: {}]   ;;  %s595_s1 = inlined_call_operand.vmem [shape: f32[16,1], index: 1, kind: output, shape index: {0}]   ;;  %s596_s2 = inlined_call_operand.vmem [shape: f32[16,1], index: 2, kind: output, shape index: {1}]  }
   0x1   :  { %10 = vsyncpa [#allocation5 + $0x1], 0  ;;  %s485_s9 = smov 0   ;;  %s487_s10 = smov 0  }
   0x2   :  { %s489_s11 = smov 0   ;;  %s491_s12 = smov 0  }
   0x3   :  { %s493_s13 = smov 0   ;;  %s495_s14 = smov 0  }
   0x4 LB: > { %s320_s15 = sadd.s32 4294967295, %s466_s14   ;;  %s28_s16 = sadd.s32 1, %s462_s13  ;;  %s466_s14 = sphi %s495_s14, %s16_s14   ;;  %s462_s13 = sphi %s493_s13, %s604_s13   ;;  %s458_s12 = sphi %s491_s12, %s603_s12   ;;  %s454_s11 = sphi %s489_s11, %s602_s11   ;;  %s450_s10 = sphi %s487_s10, %s601_s10   ;;  %s446_s9 = sphi %s485_s9, %s600_s9  }
   0x5   : > { %p30_p0 = scmp.ge.s32.totalorder %s28_s16, 2  ;;  %s37_s17 = sadd.s32 1, %s454_s11 }
   0x6   : > { %p44_p1 = scmp.ne.s32.totalorder %s454_s11, %s450_s10  ;;  %p45_p2 = scmp.eq.s32.totalorder %s466_s14, 0 }
   0x7   : > { %s606_s16 = smov (%p30_p0, %s28_s16), 0  ;;  %p50_p4 = scmp.ne.s32.totalorder %s450_s10, %s446_s9 }
   0x8   : > { %p521_p3 = por %p45_p2, %p44_p1  ;;  %s32_s19 = ssub.s32 %s462_s13, %s606_s16 }
   0x9   : > { %p51_p5 = scmp.eq.s32.totalorder %s320_s15, 0  ;;  %p35_p6 = scmp.eq.s32.totalorder %s32_s19, 0 }
   0xa   : > { %p338_p8 = scmp.lt.s32.totalorder %s466_s14, 2  ;;  %s126_s22 = sand.u32 1, %s454_s11  }
   0xb   : > { %p528_p7 = por %p51_p5, %p50_p4  ;;  %s325_s23 = sshll.u32 %s462_s13, 7 }
   0xc   : > { %s534_s21 = scalar_select %p35_p6, %s454_s11, %s37_s17  }
   0xd   : > { %s324_s24 = sshll.u32 %s126_s22, 3  ;;  %s136_s27 = scalar_lea.hbm %s594_s0, %s325_s23 }
   0xe   : > { %s130_s28 = scalar_lea.vmem [#allocation4], %s324_s24  ;;  %p543_p9 = pnand %p338_p8, %p521_p3 }
   0xf   : > { %s138_s29 = sshll.u32 %s130_s28, 4  ;;  %p326_p10 = scmp.ge.s32.totalorder %s466_s14, 1  ;;  %s139_s29 = int_to_ptr.vmem [resolvable:$true] %s138_s29 }
  0x10   : > { %p143_p11 = scmp.lt.s32.totalorder %s466_s14, 3  ;;  %s127_s3 = scalar_lea.sflag [#allocation5], %s126_s22 }
  0x11   : > { %p390_p12 = pneg %p543_p9  ;;  %s401_s4 = scalar_lea.vmem %s139_s29, 128 }
  0x12   : > { %p402_p13 = scmp.ne.s32.totalorder %s139_s29, %s401_s4  ;;  %s468_s5 = smov [#allocation4]  }
  0x13   : > { %s406_s6 = sshll.u32 %s468_s5, 4  ;;  %s407_s6 = int_to_ptr.vmem [resolvable:$false] %s406_s6 }
  0x14   : > { %p404_p0 = pnand %p402_p13, %p390_p12  ;;  %s408_s7 = scalar_lea.vmem %s407_s6, 256 }
  0x15   : > { %p409_p2 = scmp.lt.s32.totalorder %s139_s29, %s407_s6  ;;  %p410_p3 = scmp.lt.s32.totalorder %s408_s7, %s401_s4 }
  0x16   : > { %p405_p1 = pneg %p404_p0 }
  0x17   : > { %p411_p4 = por %p410_p3, %p409_p2 }
  0x19   : > { %p412_p5 = pnand %p411_p4, %p405_p1 }
  0x1b   : > { %415 = shalt.err (!%p412_p5)
}
  0x1c   : > { %337 = dma.hbm_to_vmem [thread:$0]  (!%p543_p9), %s136_s27, 128, %s139_s29, %s127_s3  }
  0x1d   : > { %p144_p6 = pnand %p326_p10, %p143_p11 }
  0x1e   : > { %s149_s8 = sand.u32 (!%p144_p6), 1, %s450_s10  }
  0x1f   : > { %147 = sbr.rel (%p144_p6) target bundleno = 200 (0xc8), region = 24  ;;  %s327_s9 = sshll.u32 (!%p144_p6), %s149_s8, 3 }
  0x20   : > { %s150_s15 = scalar_lea.sflag (!%p144_p6), [#allocation5], %s149_s8  ;;  %s153_s17 = scalar_lea.vmem (!%p144_p6), [#allocation4], %s327_s9 }
  0x24   : > { %441 = dma.done.wait (%p528_p7), %s150_s15, 128  }
  0x25   : > { %443 = vsyncadd (%p528_p7), %s150_s15, 4294967168  ;;  %vm189_vm0 = vcmask 261120   ;;  %v469_v0 = vmov 0.0   ;;  %v192_v1 = vld [vmem:[%s153_s17] sm:$0xff]  ;;  %p177_p7 = scmp.lt.s32.totalorder %s458_s12, 1  ;;  %vm208_vm1 = vcmask 7168  }
  0x26   : > { %190 = vst.msk [vmem:[#allocation2] sm:$0xff] %vm189_vm0, %v469_v0  ;;  %191 = vst.msk [vmem:[#allocation3] sm:$0xff] %vm189_vm0, %v469_v0  ;;  %v198_v4 = vmul.f32 %v192_v1, %v192_v1 }
  0x27   : > { %s608_s12 = smov (!%p177_p7, %s458_s12), 1 }
  0x28   : > { %s328_s18 = sshll.u32 %s608_s12, 3 }
  0x29   : > { %s180_s22 = scalar_lea.vmem %s595_s1, %s328_s18  ;;  %s184_s25 = scalar_lea.vmem %s596_s2, %s328_s18 }
  0x2d   : > { %v193_v2 = vld [vmem:[#allocation2] sm:$0xff]  ;;  %v197_v3 = vld [vmem:[#allocation3] sm:$0xff] }
  0x2e   : > { %v194_v5 = vadd.f32 %v193_v2, %v192_v1  ;;  %v199_v6 = vadd.f32 %v198_v4, %v197_v3 }
  0x30   : > { %196 = vst.msk [vmem:[#allocation2] sm:$0xff] %vm189_vm0, %v194_v5  ;;  %200 = vst.msk [vmem:[#allocation3] sm:$0xff] %vm189_vm0, %v199_v6 }
  0x37   : > { %v204_v7 = vld [vmem:[#allocation2] sm:$0xff]  ;;  %v210_v9 = vld [vmem:[#allocation3] sm:$0xff] }
  0x38   : > { %v205_v8 = vsel %vm189_vm0, %v204_v7, 0.0  ;;  %v211_v10 = vsel %vm189_vm0, %v210_v9, 0.0 }
  0x39   : > { %206 = vadd.xlane.f32.xlu0 %v205_v8 }
  0x3d   : > { %212 = vadd.xlane.f32.xlu0 %v211_v10 }
  0xc2   : > { %v207_v11 = vpop.xlane.xlu0 %206 }
  0xc3   : > { %209 = vst.msk [vmem:[%s180_s22] sm:$0xff] %vm208_vm1, %v207_v11 }
  0xc6   : > { %v213_v12 = vpop.xlane.xlu0 %212 }
  0xc7   : > { %214 = vst.msk [vmem:[%s184_s25] sm:$0xff] %vm208_vm1, %v213_v12 }
  0xc8 PF: > { %s16_s14 = sadd.s32 1, %s466_s14   ;;  %s600_s9 = smov %s450_s10 }
  0xc9   : > { %p13_p8 = scmp.ge.s32.totalorder %s16_s14, 4   ;;  %s601_s10 = smov %s454_s11 }
  0xca   : > { %s602_s11 = smov %s534_s21  ;;  %s603_s12 = smov %s462_s13 }
  0xcb   : > { %s604_s13 = smov %s606_s16  ;;  %15 = sbr.rel (!%p13_p8) target bundleno = 4 (0x4), region = 84 }
  0xd0   :  { %248 = vsyncpa [#allocation5], 1 }
  0xd1   :  { %250 = vsyncpa [#allocation5 + $0x1], 1 }

</bundles_post_ra>
